<compile_context>
chip_gen: v5e
topology: v5e:2x2
jax: 0.10.0
libtpu: 0.0.40
codegen_flags: <defaults>
</compile_context>

<pallas_src>
import functools

import jax
import jax.numpy as jnp
from jax.experimental import pallas as pl
from jax.experimental.pallas import tpu as pltpu


def dqn_kernel(x_ref,
               w1_ref, b1_ref,
               w2_ref, b2_ref,
               w3_ref, b3_ref,
               w4_ref, b4_ref,
               o_ref):
    # Whole forward pass fused: matmuls on the MXU (f32 accumulation),
    # bias-add / ReLU on the VPU in f32.
    x = x_ref[...]

    h1 = jnp.dot(x, w1_ref[...], preferred_element_type=jnp.float32) + b1_ref[...]
    h1 = jnp.maximum(h1, 0.0).astype(w2_ref.dtype)
    # dropout (eval mode) -> identity

    h2 = jnp.dot(h1, w2_ref[...], preferred_element_type=jnp.float32) + b2_ref[...]
    h2 = jnp.maximum(h2, 0.0).astype(w3_ref.dtype)
    # dropout (eval mode) -> identity

    h3 = jnp.dot(h2, w3_ref[...], preferred_element_type=jnp.float32) + b3_ref[...]
    h3 = jnp.maximum(h3, 0.0).astype(w4_ref.dtype)

    out = jnp.dot(h3, w4_ref[...], preferred_element_type=jnp.float32) + b4_ref[...]
    o_ref[...] = out.astype(o_ref.dtype)


def _round_up(x, m):
    return (x + m - 1) // m * m


def _pad_to(a, shape):
    return jnp.pad(a, [(0, s - d) for d, s in zip(a.shape, shape)])


def prepare_params(params, compute_dtype=jnp.bfloat16):
    """One-time weight prep (hoisted out of the per-call hot path).

    Pads the hidden feature dims to lane (128) multiples and casts the MXU
    inputs to compute_dtype.  fc1's K dim (input_dim) and fc4's N dim
    (out_dim) are deliberately left un-padded: full-dim blocks are legal and
    keep the streamed x / output HBM traffic minimal.  Biases stay f32.
    Zero padding is exact: padded weight rows/cols and biases are zero, so
    padded lanes stay zero through ReLU and contribute nothing downstream.
    """
    LANE = 128
    w1, b1 = params["fc1"]
    w2, b2 = params["fc2"]
    w3, b3 = params["fc3"]
    w4, b4 = params["fc4"]
    input_dim, hidden = w1.shape
    half = w3.shape[1]
    out_dim = w4.shape[1]

    h_p = _round_up(hidden, LANE)
    f_p = _round_up(half, LANE)

    w1_p = _pad_to(w1, (input_dim, h_p)).astype(compute_dtype)   # K left at input_dim
    w2_p = _pad_to(w2, (h_p, h_p)).astype(compute_dtype)
    w3_p = _pad_to(w3, (h_p, f_p)).astype(compute_dtype)
    w4_p = _pad_to(w4, (f_p, out_dim)).astype(compute_dtype)     # N left at out_dim
    b1_p = _pad_to(b1, (1, h_p)).astype(jnp.float32)
    b2_p = _pad_to(b2, (1, h_p)).astype(jnp.float32)
    b3_p = _pad_to(b3, (1, f_p)).astype(jnp.float32)
    b4_p = b4.astype(jnp.float32)
    return (w1_p, b1_p, w2_p, b2_p, w3_p, b3_p, w4_p, b4_p)


@functools.partial(jax.jit, static_argnames=("tb",))
def simple_dqn_forward(x, prepared, tb=2048):
    """x: [B, input_dim] float32.  prepared: output of prepare_params().

    tb: batch rows per grid step.  2048 is a good default for v5e/v6e
    (128 MiB VMEM); cap around 4096 on v7x (64 MiB VMEM per TC).  On v7x both
    TensorCores are used via the "parallel" batch axis once the batch spans
    >= 2 grid steps; on single-TC chips the grid is just a serial loop.
    """
    (w1_p, b1_p, w2_p, b2_p, w3_p, b3_p, w4_p, b4_p) = prepared
    B, input_dim = x.shape
    assert w1_p.shape[0] == input_dim
    h_p = w1_p.shape[1]
    f_p = w3_p.shape[1]
    out_dim = w4_p.shape[1]
    compute_dtype = w1_p.dtype

    # Batch tiling: pad to a multiple of 8 sublanes, clamp the tile to the
    # batch, and let large batches split naturally into multiple grid steps.
    B_pad8 = _round_up(B, 8)
    n_tiles = max(1, pl.cdiv(B_pad8, tb))
    tb_eff = _round_up(pl.cdiv(B_pad8, n_tiles), 8)
    B_pad = tb_eff * n_tiles

    x_p = _pad_to(x, (B_pad, input_dim)).astype(compute_dtype)

    # Weights/biases stay fully resident each step (block == full array,
    # constant index_map -> fetched once, not per grid step).
    def full(shape):
        return pl.BlockSpec(shape, lambda i: (0,) * len(shape))

    out = pl.pallas_call(
        dqn_kernel,
        out_shape=jax.ShapeDtypeStruct((B_pad, out_dim), jnp.float32),
        grid_spec=pl.GridSpec(
            grid=(B_pad // tb_eff,),
            in_specs=[
                pl.BlockSpec((tb_eff, input_dim), lambda i: (i, 0)),  # x
                full((input_dim, h_p)), full((1, h_p)),               # fc1
                full((h_p, h_p)), full((1, h_p)),                     # fc2
                full((h_p, f_p)), full((1, f_p)),                     # fc3
                full((f_p, out_dim)), full((1, out_dim)),             # fc4
            ],
            out_specs=pl.BlockSpec((tb_eff, out_dim), lambda i: (i, 0)),
        ),
        compiler_params=pltpu.CompilerParams(
            dimension_semantics=("parallel",),
            vmem_limit_bytes=48 * 1024 * 1024),
    )(x_p, w1_p, b1_p, w2_p, b2_p, w3_p, b3_p, w4_p, b4_p)

    return out[:B]


def init_params(key, input_dim, hidden_dim, output_dim):
    """Deterministic synthetic init (uniform, PyTorch-Linear-like scale)."""
    dims = [(input_dim, hidden_dim),
            (hidden_dim, hidden_dim),
            (hidden_dim, hidden_dim // 2),
            (hidden_dim // 2, output_dim)]
    names = ["fc1", "fc2", "fc3", "fc4"]
    params = {}
    for name, (fan_in, fan_out) in zip(names, dims):
        key, kw, kb = jax.random.split(key, 3)
        bound = 1.0 / jnp.sqrt(jnp.float32(fan_in))
        w = jax.random.uniform(kw, (fan_in, fan_out), jnp.float32, -bound, bound)
        b = jax.random.uniform(kb, (1, fan_out), jnp.float32, -bound, bound)
        params[name] = (w, b)
    return params


def reference_forward(x, params):
    h = x
    for name in ["fc1", "fc2", "fc3"]:
        w, b = params[name]
        h = jnp.maximum(h @ w + b, 0.0)
    w, b = params["fc4"]
    return h @ w + b


if __name__ == "__main__":
    # Small shapes consistent with the module defaults: hidden_dim=256,
    # output_dim=4; small input_dim and a ragged batch to exercise padding.
    B, INPUT_DIM, HIDDEN_DIM, OUTPUT_DIM = 6, 16, 256, 4

    key = jax.random.PRNGKey(0)
    key, kx = jax.random.split(key)
    x = jax.random.normal(kx, (B, INPUT_DIM), jnp.float32)
    params = init_params(key, INPUT_DIM, HIDDEN_DIM, OUTPUT_DIM)

    ref = reference_forward(x, params)

    # bf16 MXU-input path (the new default): f32 accumulation + f32 bias/ReLU.
    prep_bf16 = prepare_params(params, jnp.bfloat16)
    out_bf16 = jax.block_until_ready(simple_dqn_forward(x, prep_bf16, tb=2048))
    assert out_bf16.shape == (B, OUTPUT_DIM)
    assert jnp.allclose(out_bf16, ref, atol=5e-2, rtol=5e-2), "bf16 mismatch vs reference"

    # Full-f32 path (use when tighter numerics are required).
    prep_f32 = prepare_params(params, jnp.float32)
    out_f32 = jax.block_until_ready(simple_dqn_forward(x, prep_f32, tb=2048))
    assert out_f32.shape == (B, OUTPUT_DIM)
    assert jnp.allclose(out_f32, ref, atol=1e-4, rtol=1e-4), "f32 mismatch vs reference"

    print("KERNEL_OK")
</pallas_src>

<mosaic_0001>
module attributes {stable_mosaic.version = 11 : i64} {
  func.func @dqn_kernel(%arg0: i32, %arg1: memref<8x16xbf16, #tpu.memory_space<vmem>>, %arg2: memref<16x256xbf16, #tpu.memory_space<vmem>>, %arg3: memref<1x256xf32, #tpu.memory_space<vmem>>, %arg4: memref<256x256xbf16, #tpu.memory_space<vmem>>, %arg5: memref<1x256xf32, #tpu.memory_space<vmem>>, %arg6: memref<256x128xbf16, #tpu.memory_space<vmem>>, %arg7: memref<1x128xf32, #tpu.memory_space<vmem>>, %arg8: memref<128x4xbf16, #tpu.memory_space<vmem>>, %arg9: memref<1x4xf32, #tpu.memory_space<vmem>>, %arg10: memref<8x4xf32, #tpu.memory_space<vmem>>) attributes {dimension_semantics = [#tpu.dimension_semantics<parallel>], iteration_bounds = array<i64: 1>, scalar_prefetch = 0 : i64, scratch_operands = 0 : i64, tpu.core_type = #tpu.core_type<tc>, window_params = [{transform_indices = @transform_0, window_bounds = array<i64: 8, 16>}, {pipeline_mode = #tpu.pipeline_mode<synchronous>, transform_indices = @transform_1, window_bounds = array<i64: 16, 256>}, {pipeline_mode = #tpu.pipeline_mode<synchronous>, transform_indices = @transform_2, window_bounds = array<i64: 1, 256>}, {pipeline_mode = #tpu.pipeline_mode<synchronous>, transform_indices = @transform_3, window_bounds = array<i64: 256, 256>}, {pipeline_mode = #tpu.pipeline_mode<synchronous>, transform_indices = @transform_4, window_bounds = array<i64: 1, 256>}, {pipeline_mode = #tpu.pipeline_mode<synchronous>, transform_indices = @transform_5, window_bounds = array<i64: 256, 128>}, {pipeline_mode = #tpu.pipeline_mode<synchronous>, transform_indices = @transform_6, window_bounds = array<i64: 1, 128>}, {pipeline_mode = #tpu.pipeline_mode<synchronous>, transform_indices = @transform_7, window_bounds = array<i64: 128, 4>}, {pipeline_mode = #tpu.pipeline_mode<synchronous>, transform_indices = @transform_8, window_bounds = array<i64: 1, 4>}, {transform_indices = @transform_9, window_bounds = array<i64: 8, 4>}]} {
    %c0 = arith.constant 0 : index
    %c0_0 = arith.constant 0 : index
    %0 = vector.load %arg1[%c0, %c0_0] : memref<8x16xbf16, #tpu.memory_space<vmem>>, vector<8x16xbf16>
    %c0_1 = arith.constant 0 : index
    %c0_2 = arith.constant 0 : index
    %1 = vector.load %arg2[%c0_1, %c0_2] : memref<16x256xbf16, #tpu.memory_space<vmem>>, vector<16x256xbf16>
    %cst = arith.constant dense<0.000000e+00> : vector<8x256xf32>
    %2 = tpu.matmul %0, %1, %cst {dimension_numbers = #tpu.dot_dimension_numbers<[1], [0], [0], [1], [0, 0, 1, 1], [], []>} : vector<8x16xbf16>, vector<16x256xbf16>, vector<8x256xf32> -> vector<8x256xf32>
    %c0_3 = arith.constant 0 : index
    %c0_4 = arith.constant 0 : index
    %3 = vector.load %arg3[%c0_3, %c0_4] : memref<1x256xf32, #tpu.memory_space<vmem>>, vector<1x256xf32>
    %4 = vector.broadcast %3 : vector<1x256xf32> to vector<8x256xf32>
    %5 = arith.addf %2, %4 : vector<8x256xf32>
    %cst_5 = arith.constant 0.000000e+00 : f32
    %6 = vector.broadcast %cst_5 : f32 to vector<8x256xf32>
    %7 = arith.maximumf %5, %6 : vector<8x256xf32>
    %8 = arith.truncf %7 : vector<8x256xf32> to vector<8x256xbf16>
    %c0_6 = arith.constant 0 : index
    %c0_7 = arith.constant 0 : index
    %9 = vector.load %arg4[%c0_6, %c0_7] : memref<256x256xbf16, #tpu.memory_space<vmem>>, vector<256x256xbf16>
    %cst_8 = arith.constant dense<0.000000e+00> : vector<8x256xf32>
    %10 = tpu.matmul %8, %9, %cst_8 {dimension_numbers = #tpu.dot_dimension_numbers<[1], [0], [0], [1], [0, 0, 1, 1], [], []>} : vector<8x256xbf16>, vector<256x256xbf16>, vector<8x256xf32> -> vector<8x256xf32>
    %c0_9 = arith.constant 0 : index
    %c0_10 = arith.constant 0 : index
    %11 = vector.load %arg5[%c0_9, %c0_10] : memref<1x256xf32, #tpu.memory_space<vmem>>, vector<1x256xf32>
    %12 = vector.broadcast %11 : vector<1x256xf32> to vector<8x256xf32>
    %13 = arith.addf %10, %12 : vector<8x256xf32>
    %cst_11 = arith.constant 0.000000e+00 : f32
    %14 = vector.broadcast %cst_11 : f32 to vector<8x256xf32>
    %15 = arith.maximumf %13, %14 : vector<8x256xf32>
    %16 = arith.truncf %15 : vector<8x256xf32> to vector<8x256xbf16>
    %c0_12 = arith.constant 0 : index
    %c0_13 = arith.constant 0 : index
    %17 = vector.load %arg6[%c0_12, %c0_13] : memref<256x128xbf16, #tpu.memory_space<vmem>>, vector<256x128xbf16>
    %cst_14 = arith.constant dense<0.000000e+00> : vector<8x128xf32>
    %18 = tpu.matmul %16, %17, %cst_14 {dimension_numbers = #tpu.dot_dimension_numbers<[1], [0], [0], [1], [0, 0, 1, 1], [], []>} : vector<8x256xbf16>, vector<256x128xbf16>, vector<8x128xf32> -> vector<8x128xf32>
    %c0_15 = arith.constant 0 : index
    %c0_16 = arith.constant 0 : index
    %19 = vector.load %arg7[%c0_15, %c0_16] : memref<1x128xf32, #tpu.memory_space<vmem>>, vector<1x128xf32>
    %20 = vector.broadcast %19 : vector<1x128xf32> to vector<8x128xf32>
    %21 = arith.addf %18, %20 : vector<8x128xf32>
    %cst_17 = arith.constant 0.000000e+00 : f32
    %22 = vector.broadcast %cst_17 : f32 to vector<8x128xf32>
    %23 = arith.maximumf %21, %22 : vector<8x128xf32>
    %24 = arith.truncf %23 : vector<8x128xf32> to vector<8x128xbf16>
    %c0_18 = arith.constant 0 : index
    %c0_19 = arith.constant 0 : index
    %25 = vector.load %arg8[%c0_18, %c0_19] : memref<128x4xbf16, #tpu.memory_space<vmem>>, vector<128x4xbf16>
    %cst_20 = arith.constant dense<0.000000e+00> : vector<8x4xf32>
    %26 = tpu.matmul %24, %25, %cst_20 {dimension_numbers = #tpu.dot_dimension_numbers<[1], [0], [0], [1], [0, 0, 1, 1], [], []>} : vector<8x128xbf16>, vector<128x4xbf16>, vector<8x4xf32> -> vector<8x4xf32>
    %c0_21 = arith.constant 0 : index
    %c0_22 = arith.constant 0 : index
    %27 = vector.load %arg9[%c0_21, %c0_22] : memref<1x4xf32, #tpu.memory_space<vmem>>, vector<1x4xf32>
    %28 = vector.broadcast %27 : vector<1x4xf32> to vector<8x4xf32>
    %29 = arith.addf %26, %28 : vector<8x4xf32>
    %c0_23 = arith.constant 0 : index
    %c0_24 = arith.constant 0 : index
    %30 = vector.load %arg10[%c0_23, %c0_24] : memref<8x4xf32, #tpu.memory_space<vmem>>, vector<8x4xf32>
    tpu.vector_store %arg10[%c0_23, %c0_24], %29 {strides = array<i32>} : memref<8x4xf32, #tpu.memory_space<vmem>>, vector<8x4xf32>,
    return
  }
  func.func @transform_0(%arg0: i32) -> (i32, i32) {
    %c0_i32 = arith.constant 0 : i32
    %c0_i32_0 = arith.constant 0 : i32
    return %arg0, %c0_i32 : i32, i32
  }
  func.func @transform_1(%arg0: i32) -> (i32, i32) {
    %c0_i32 = arith.constant 0 : i32
    %c0_i32_0 = arith.constant 0 : i32
    %c0_i32_1 = arith.constant 0 : i32
    return %c0_i32, %c0_i32_0 : i32, i32
  }
  func.func @transform_2(%arg0: i32) -> (i32, i32) {
    %c0_i32 = arith.constant 0 : i32
    %c0_i32_0 = arith.constant 0 : i32
    %c0_i32_1 = arith.constant 0 : i32
    return %c0_i32, %c0_i32_0 : i32, i32
  }
  func.func @transform_3(%arg0: i32) -> (i32, i32) {
    %c0_i32 = arith.constant 0 : i32
    %c0_i32_0 = arith.constant 0 : i32
    %c0_i32_1 = arith.constant 0 : i32
    return %c0_i32, %c0_i32_0 : i32, i32
  }
  func.func @transform_4(%arg0: i32) -> (i32, i32) {
    %c0_i32 = arith.constant 0 : i32
    %c0_i32_0 = arith.constant 0 : i32
    %c0_i32_1 = arith.constant 0 : i32
    return %c0_i32, %c0_i32_0 : i32, i32
  }
  func.func @transform_5(%arg0: i32) -> (i32, i32) {
    %c0_i32 = arith.constant 0 : i32
    %c0_i32_0 = arith.constant 0 : i32
    %c0_i32_1 = arith.constant 0 : i32
    return %c0_i32, %c0_i32_0 : i32, i32
  }
  func.func @transform_6(%arg0: i32) -> (i32, i32) {
    %c0_i32 = arith.constant 0 : i32
    %c0_i32_0 = arith.constant 0 : i32
    %c0_i32_1 = arith.constant 0 : i32
    return %c0_i32, %c0_i32_0 : i32, i32
  }
  func.func @transform_7(%arg0: i32) -> (i32, i32) {
    %c0_i32 = arith.constant 0 : i32
    %c0_i32_0 = arith.constant 0 : i32
    %c0_i32_1 = arith.constant 0 : i32
    return %c0_i32, %c0_i32_0 : i32, i32
  }
  func.func @transform_8(%arg0: i32) -> (i32, i32) {
    %c0_i32 = arith.constant 0 : i32
    %c0_i32_0 = arith.constant 0 : i32
    %c0_i32_1 = arith.constant 0 : i32
    return %c0_i32, %c0_i32_0 : i32, i32
  }
  func.func @transform_9(%arg0: i32) -> (i32, i32) {
    %c0_i32 = arith.constant 0 : i32
    %c0_i32_0 = arith.constant 0 : i32
    return %arg0, %c0_i32 : i32, i32
  }
}

</mosaic_0001>

<bundles_post_ra>
// kernel: simple_dqn_forward.1
= control target key start
LH: loop header
LB: loop body
LE: loop exit
PB: predicated region body
PF: predicated region fallthrough
CT: control target
= control target key end

     0   :  { %14 = vsyncpa [#allocation3], 0  ;;  %s1095_s0 = inlined_call_operand.vmem [shape: bf16[8,16], index: 0, kind: input, shape index: {}]   ;;  %s1096_s1 = inlined_call_operand.vmem [shape: bf16[16,256], index: 1, kind: input, shape index: {}]   ;;  %s1097_s2 = inlined_call_operand.vmem [shape: f32[1,256], index: 2, kind: input, shape index: {}]   ;;  %s1098_s3 = inlined_call_operand.hbm [shape: bf16[256,256], index: 3, kind: input, shape index: {}]   ;;  %s1099_s4 = inlined_call_operand.vmem [shape: f32[1,256], index: 4, kind: input, shape index: {}]   ;;  %s1100_s5 = inlined_call_operand.hbm [shape: bf16[256,128], index: 5, kind: input, shape index: {}]   ;;  %s1101_s6 = inlined_call_operand.vmem [shape: f32[1,128], index: 6, kind: input, shape index: {}]   ;;  %s1102_s7 = inlined_call_operand.vmem [shape: bf16[128,4], index: 7, kind: input, shape index: {}]   ;;  %s1103_s8 = inlined_call_operand.vmem [shape: f32[1,4], index: 8, kind: input, shape index: {}]   ;;  %s1104_s9 = inlined_call_operand.vmem [shape: f32[8,4], index: 9, kind: output, shape index: {}]  }
   0x1   :  { %s26_s11 = sshll.u32 %s1098_s3, 4  ;;  %s27_s11 = int_to_ptr.hbm [resolvable:$true] %s26_s11 }
   0x2   :  { %15 = vsyncpa [#allocation5], 0  ;;  %s973_s12 = smov [#allocation2]   ;;  %s41_s16 = sshll.u32 %s1100_s5, 4  ;;  %s42_s16 = int_to_ptr.hbm [resolvable:$true] %s41_s16 }
   0x3   :  { %s28_s13 = sshll.u32 %s973_s12, 4  ;;  %s974_s17 = smov 128   ;;  %s29_s13 = int_to_ptr.vmem [resolvable:$true] %s28_s13 }
   0x4   :  { %s975_s18 = smov 8   ;;  %s976_s19 = smov [#allocation4]  }
   0x5   :  { %34 = dma.hbm_to_vmem [thread:$0]  %s27_s11, 4096, %s29_s13, [#allocation3], %s974_s17, %s974_s17, %s975_s18  }
   0x6   :  { %s43_s20 = sshll.u32 %s976_s19, 4  ;;  %s977_s21 = smov 64   ;;  %s44_s20 = int_to_ptr.vmem [resolvable:$true] %s43_s20 }
   0x7   :  { %s978_s22 = smov 4  }
   0x8   :  { %49 = dma.hbm_to_vmem [thread:$0]  %s42_s16, 2048, %s44_s20, [#allocation5], %s977_s21, %s977_s21, %s978_s22  }
   0x9   :  { %969 = dma.done.wait [#allocation3], 4096  }
   0xa   :  { %970 = vsyncadd [#allocation3], 4294963200 }
   0xb   :  { %971 = dma.done.wait [#allocation5], 2048  }
   0xc   :  { %972 = vsyncadd [#allocation5], 4294965248  ;;  %v623_v0 = vld [vmem:[%s1096_s1] sm:$0xf]  ;;  %v856_v1 = vld [vmem:[%s1096_s1 + $0x4] sm:$0xf0] }
   0xd   :  { %vm84_vm0 = vcmask 130048   ;;  %v624_v2 = vor.u32 %v856_v1, %v623_v0  ;;  %v1044_v3 = vld [vmem:[%s1095_s0] sm:$0xf]  ;;  %v855_v4 = vld [vmem:[%s1096_s1 + $0x4] sm:$0xf]  ;;  %vm613_vm1 = vcmask 31744  }
   0xe   :  { %v625_v5 = vld [vmem:[%s1096_s1 + $0x8] sm:$0xf0]  ;;  %v689_v6 = vld [vmem:[#allocation2 + $0x70] sm:$0xf]  ;;  %v872_v8 = vld [vmem:[#allocation2 + $0x74] sm:$0xf0] }
   0xf   :  { %v628_v7 = vor.u32 %v855_v4, %v625_v5  ;;  %v871_v9 = vld [vmem:[#allocation2 + $0x74] sm:$0xf]  ;;  %v691_v10 = vld [vmem:[#allocation2 + $0x78] sm:$0xf0]  ;;  %95 = vmatpush.bf16.msra.mxu1 %v624_v2  ;;  %v690_v11 = vor.u32 %v872_v8, %v689_v6  ;;  %v681_v13 = vld [vmem:[#allocation2 + $0x60] sm:$0xf] }
  0x10   :  { %v694_v12 = vor.u32 %v871_v9, %v691_v10  ;;  %v870_v14 = vld [vmem:[#allocation2 + $0x64] sm:$0xf0]  ;;  %v869_v15 = vld [vmem:[#allocation2 + $0x64] sm:$0xf]  ;;  %v683_v16 = vld [vmem:[#allocation2 + $0x68] sm:$0xf0] }
  0x11   :  { %316 = vmatpush.bf16.msra.mxu2 %v690_v11  ;;  %v682_v17 = vor.u32 %v870_v14, %v681_v13  ;;  %v686_v18 = vor.u32 %v869_v15, %v683_v16  ;;  %v673_v19 = vld [vmem:[#allocation2 + $0x50] sm:$0xf]  ;;  %v868_v20 = vld [vmem:[#allocation2 + $0x54] sm:$0xf0]  ;;  %v867_v21 = vld [vmem:[#allocation2 + $0x54] sm:$0xf] }
  0x12   :  { %342 = vmatpush.bf16.msra.mxu0 %v694_v12  ;;  %629 = vmatmul.msk.bf16.vlgmr.msra.gmra.mxu1 %vm84_vm0, %v1044_v3  ;;  %v675_v22 = vld [vmem:[#allocation2 + $0x58] sm:$0xf0]  ;;  %v753_v23 = vld [vmem:[#allocation2 + $0xf0] sm:$0xf]  ;;  %v665_v24 = vld [vmem:[#allocation2 + $0x40] sm:$0xf]  ;;  %v674_v27 = vor.u32 %v868_v20, %v673_v19 }
  0x13   :  { %108 = vmatpush.bf16.msrb.mxu1 %v628_v7  ;;  %v866_v25 = vld [vmem:[#allocation2 + $0x44] sm:$0xf0]  ;;  %v888_v26 = vld [vmem:[#allocation2 + $0xf4] sm:$0xf0]  ;;  %v678_v28 = vor.u32 %v867_v21, %v675_v22  ;;  %v865_v29 = vld [vmem:[#allocation2 + $0x44] sm:$0xf] }
  0x14   :  { %v754_v30 = vor.u32 %v888_v26, %v753_v23  ;;  %v887_v31 = vld [vmem:[#allocation2 + $0xf4] sm:$0xf]  ;;  %v755_v32 = vld [vmem:[#allocation2 + $0xf8] sm:$0xf0]  ;;  %v667_v33 = vld [vmem:[#allocation2 + $0x48] sm:$0xf0]  ;;  %v666_v40 = vor.u32 %v866_v25, %v665_v24 }
  0x15   :  { %317 = vmatpush.bf16.msra.mxu2 %v682_v17  ;;  %v758_v34 = vor.u32 %v887_v31, %v755_v32  ;;  %v745_v35 = vld [vmem:[#allocation2 + $0xe0] sm:$0xf]  ;;  %v886_v36 = vld [vmem:[#allocation2 + $0xe4] sm:$0xf0]  ;;  %v885_v38 = vld [vmem:[#allocation2 + $0xe4] sm:$0xf]  ;;  %v670_v41 = vor.u32 %v865_v29, %v667_v33 }
  0x16   :  { %343 = vmatpush.bf16.msra.mxu0 %v686_v18  ;;  %329 = vmatpush.bf16.msra.mxu3 %v754_v30  ;;  %v746_v37 = vor.u32 %v886_v36, %v745_v35  ;;  %v747_v39 = vld [vmem:[#allocation2 + $0xe8] sm:$0xf0]  ;;  %v657_v42 = vld [vmem:[#allocation2 + $0x30] sm:$0xf]  ;;  %v864_v44 = vld [vmem:[#allocation2 + $0x34] sm:$0xf0] }
  0x17   :  { %355 = vmatpush.bf16.msra.mxu1 %v758_v34  ;;  %v750_v43 = vor.u32 %v885_v38, %v747_v39  ;;  %v863_v45 = vld [vmem:[#allocation2 + $0x34] sm:$0xf]  ;;  %v659_v46 = vld [vmem:[#allocation2 + $0x38] sm:$0xf0]  ;;  %v658_v47 = vor.u32 %v864_v44, %v657_v42  ;;  %v649_v49 = vld [vmem:[#allocation2 + $0x20] sm:$0xf] }
  0x18   :  { %v662_v48 = vor.u32 %v863_v45, %v659_v46  ;;  %v862_v50 = vld [vmem:[#allocation2 + $0x24] sm:$0xf0]  ;;  %v861_v51 = vld [vmem:[#allocation2 + $0x24] sm:$0xf]  ;;  %v651_v52 = vld [vmem:[#allocation2 + $0x28] sm:$0xf0] }
  0x19   :  { %318 = vmatpush.bf16.msra.mxu2 %v674_v27  ;;  %v650_v53 = vor.u32 %v862_v50, %v649_v49  ;;  %v654_v54 = vor.u32 %v861_v51, %v651_v52  ;;  %v641_v55 = vld [vmem:[#allocation2 + $0x10] sm:$0xf]  ;;  %v860_v56 = vld [vmem:[#allocation2 + $0x14] sm:$0xf0]  ;;  %v859_v60 = vld [vmem:[#allocation2 + $0x14] sm:$0xf] }
  0x1a   :  { %344 = vmatpush.bf16.msra.mxu0 %v678_v28  ;;  %330 = vmatpush.bf16.msra.mxu3 %v746_v37  ;;  %v737_v57 = vld [vmem:[#allocation2 + $0xd0] sm:$0xf]  ;;  %v642_v58 = vor.u32 %v860_v56, %v641_v55  ;;  %v884_v59 = vld [vmem:[#allocation2 + $0xd4] sm:$0xf0]  ;;  %v643_v61 = vld [vmem:[#allocation2 + $0x18] sm:$0xf0] }
  0x1b   :  { %356 = vmatpush.bf16.msra.mxu1 %v750_v43  ;;  %v738_v62 = vor.u32 %v884_v59, %v737_v57  ;;  %v646_v63 = vor.u32 %v859_v60, %v643_v61  ;;  %v883_v0 = vld [vmem:[#allocation2 + $0xd4] sm:$0xf]  ;;  %v739_v1 = vld [vmem:[#allocation2 + $0xd8] sm:$0xf0]  ;;  %v633_v4 = vld [vmem:[#allocation2] sm:$0xf] }
  0x1c   :  { %v742_v2 = vor.u32 %v883_v0, %v739_v1  ;;  %v858_v5 = vld [vmem:[#allocation2 + $0x4] sm:$0xf0]  ;;  %v857_v8 = vld [vmem:[#allocation2 + $0x4] sm:$0xf]  ;;  %v635_v9 = vld [vmem:[#allocation2 + $0x8] sm:$0xf0] }
  0x1d   :  { %319 = vmatpush.bf16.msra.mxu2 %v666_v40  ;;  %v634_v6 = vor.u32 %v858_v5, %v633_v4  ;;  %v882_v7 = vld [vmem:[#allocation2 + $0xc4] sm:$0xf0]  ;;  %v638_v11 = vor.u32 %v857_v8, %v635_v9  ;;  %v881_v12 = vld [vmem:[#allocation2 + $0xc4] sm:$0xf]  ;;  %v731_v13 = vld [vmem:[#allocation2 + $0xc8] sm:$0xf0] }
  0x1e   :  { %345 = vmatpush.bf16.msra.mxu0 %v670_v41  ;;  %331 = vmatpush.bf16.msra.mxu3 %v738_v62  ;;  %v734_v14 = vor.u32 %v881_v12, %v731_v13  ;;  %v721_v15 = vld [vmem:[#allocation2 + $0xb0] sm:$0xf]  ;;  %v880_v16 = vld [vmem:[#allocation2 + $0xb4] sm:$0xf0]  ;;  %v879_v17 = vld [vmem:[#allocation2 + $0xb4] sm:$0xf] }
  0x1f   :  { %357 = vmatpush.bf16.msra.mxu1 %v742_v2  ;;  %v722_v18 = vor.u32 %v880_v16, %v721_v15  ;;  %v723_v19 = vld [vmem:[#allocation2 + $0xb8] sm:$0xf0]  ;;  %v713_v21 = vld [vmem:[#allocation2 + $0xa0] sm:$0xf]  ;;  %v878_v22 = vld [vmem:[#allocation2 + $0xa4] sm:$0xf0] }
  0x20   :  { %v726_v20 = vor.u32 %v879_v17, %v723_v19  ;;  %v877_v23 = vld [vmem:[#allocation2 + $0xa4] sm:$0xf]  ;;  %v714_v24 = vor.u32 %v878_v22, %v713_v21  ;;  %v715_v25 = vld [vmem:[#allocation2 + $0xa8] sm:$0xf0]  ;;  %v705_v27 = vld [vmem:[#allocation2 + $0x90] sm:$0xf] }
  0x21   :  { %320 = vmatpush.bf16.msra.mxu2 %v658_v47  ;;  %v718_v26 = vor.u32 %v877_v23, %v715_v25  ;;  %v876_v28 = vld [vmem:[#allocation2 + $0x94] sm:$0xf0]  ;;  %v875_v29 = vld [vmem:[#allocation2 + $0x94] sm:$0xf]  ;;  %v707_v31 = vld [vmem:[#allocation2 + $0x98] sm:$0xf0] }
  0x22   :  { %346 = vmatpush.bf16.msra.mxu0 %v662_v48  ;;  %630 = vmatmul.msk.bf16.vlgmr.msrb.gmra.mxu1 %vm84_vm0, %v1044_v3  ;;  %v729_v3 = vld [vmem:[#allocation2 + $0xc0] sm:$0xf]  ;;  %v706_v30 = vor.u32 %v876_v28, %v705_v27  ;;  %v710_v32 = vor.u32 %v875_v29, %v707_v31  ;;  %v874_v34 = vld [vmem:[#allocation2 + $0x84] sm:$0xf0]  ;;  %v873_v35 = vld [vmem:[#allocation2 + $0x84] sm:$0xf] }
  0x23   :  { %v730_v10 = vor.u32 %v882_v7, %v729_v3  ;;  %358 = vmatpush.bf16.msra.mxu1 %v734_v14  ;;  %v697_v33 = vld [vmem:[#allocation2 + $0x80] sm:$0xf]  ;;  %v699_v37 = vld [vmem:[#allocation2 + $0x88] sm:$0xf0]  ;;  %v904_v39 = vld [vmem:[#allocation4 + $0x78] sm:$0xff] }
  0x24   :  { %v698_v36 = vor.u32 %v874_v34, %v697_v33  ;;  %v702_v38 = vor.u32 %v873_v35, %v699_v37  ;;  %v896_v40 = vld [vmem:[#allocation4 + $0x38] sm:$0xff]  ;;  %v68_v41 = vld [vmem:[%s1097_s2] sm:$0x3]  ;;  %v903_v42 = vld [vmem:[#allocation4 + $0x70] sm:$0xff] }
  0x25   :  { %321 = vmatpush.bf16.msra.mxu2 %v650_v53  ;;  %332 = vmatpush.bf16.msra.mxu3 %v730_v10  ;;  %v70_v43 = vperm.slane %v68_v41, 0  ;;  %v71_v49 = vperm.slane %v68_v41, 1  ;;  %v902_v55 = vld [vmem:[#allocation4 + $0x68] sm:$0xff]  ;;  %v895_v56 = vld [vmem:[#allocation4 + $0x30] sm:$0xff]  ;;  %v901_v57 = vld [vmem:[#allocation4 + $0x60] sm:$0xff] }
  0x26   :  { %347 = vmatpush.bf16.msra.mxu0 %v654_v54  ;;  %v900_v59 = vld [vmem:[#allocation4 + $0x58] sm:$0xff]  ;;  %v893_v60 = vld [vmem:[#allocation4 + $0x20] sm:$0xff]  ;;  %v899_v61 = vld [vmem:[#allocation4 + $0x50] sm:$0xff] }
  0x27   :  { %359 = vmatpush.bf16.msra.mxu1 %v726_v20  ;;  %v892_v62 = vld [vmem:[#allocation4 + $0x18] sm:$0xff]  ;;  %v891_v0 = vld [vmem:[#allocation4 + $0x10] sm:$0xff]  ;;  %v897_v1 = vld [vmem:[#allocation4 + $0x40] sm:$0xff] }
  0x28   :  { %v890_v2 = vld [vmem:[#allocation4 + $0x8] sm:$0xff]  ;;  %v889_v4 = vld [vmem:[#allocation4] sm:$0xff]  ;;  %v912_v5 = vld [vmem:[%s1102_s7 + $0x38] sm:$0xff] }
  0x29   :  { %322 = vmatpush.bf16.msra.mxu2 %v642_v58  ;;  %333 = vmatpush.bf16.msra.mxu3 %v722_v18  ;;  %v894_v58 = vld [vmem:[#allocation4 + $0x28] sm:$0xff]  ;;  %v150_v9 = vld [vmem:[%s1099_s4] sm:$0x3]  ;;  %v908_v27 = vld [vmem:[%s1102_s7 + $0x18] sm:$0xff] }
  0x2a   :  { %348 = vmatpush.bf16.msra.mxu0 %v646_v63  ;;  %v898_v63 = vld [vmem:[#allocation4 + $0x48] sm:$0xff]  ;;  %v153_v12 = vperm.slane %v150_v9, 1  ;;  %v152_v16 = vperm.slane %v150_v9, 0  ;;  %v907_v28 = vld [vmem:[%s1102_s7 + $0x10] sm:$0xff] }
  0x2b   :  { %360 = vmatpush.bf16.msra.mxu1 %v718_v26  ;;  %v910_v7 = vld [vmem:[%s1102_s7 + $0x28] sm:$0xff] }
  0x2c   :  { %v906_v29 = vld [vmem:[%s1102_s7 + $0x8] sm:$0xff] }
  0x2d   :  { %323 = vmatpush.bf16.msra.mxu2 %v634_v6  ;;  %334 = vmatpush.bf16.msra.mxu3 %v714_v24  ;;  %v911_v6 = vld [vmem:[%s1102_s7 + $0x30] sm:$0xff] }
  0x2e   :  { %349 = vmatpush.bf16.msra.mxu0 %v638_v11  ;;  %v909_v11 = vld [vmem:[%s1102_s7 + $0x20] sm:$0xff] }
  0x2f   :  { %361 = vmatpush.bf16.msra.mxu1 %v710_v32  ;;  %v919_v32 = vld [vmem:[%s1101_s6] ss:$0 sm:$0xff] }
  0x31   :  { %335 = vmatpush.bf16.msra.mxu3 %v706_v30  ;;  %504 = vmatpush.bf16.msrb.mxu2 %v896_v40  ;;  %v905_v30 = vld [vmem:[%s1102_s7] sm:$0xff] }
  0x32   :  { %600 = vmatpush.bf16.msrb.mxu0 %v912_v5  ;;  %v920_v40 = vld [vmem:[%s1103_s8] ss:$0 sm:$0xff] }
  0x33   :  { %362 = vmatpush.bf16.msra.mxu1 %v702_v38 }
  0x35   :  { %336 = vmatpush.bf16.msra.mxu3 %v698_v36  ;;  %505 = vmatpush.bf16.msrb.mxu2 %v895_v56 }
  0x36   :  { %601 = vmatpush.bf16.msrb.mxu0 %v911_v6 }
  0x39   :  { %517 = vmatpush.bf16.msrb.mxu3 %v904_v39  ;;  %506 = vmatpush.bf16.msrb.mxu2 %v894_v58 }
  0x3a   :  { %602 = vmatpush.bf16.msrb.mxu0 %v910_v7 }
  0x3d   :  { %518 = vmatpush.bf16.msrb.mxu3 %v903_v42  ;;  %507 = vmatpush.bf16.msrb.mxu2 %v893_v60 }
  0x3e   :  { %603 = vmatpush.bf16.msrb.mxu0 %v909_v11 }
  0x41   :  { %519 = vmatpush.bf16.msrb.mxu3 %v902_v55  ;;  %508 = vmatpush.bf16.msrb.mxu2 %v892_v62 }
  0x42   :  { %604 = vmatpush.bf16.msrb.mxu0 %v908_v27 }
  0x45   :  { %520 = vmatpush.bf16.msrb.mxu3 %v901_v57  ;;  %509 = vmatpush.bf16.msrb.mxu2 %v891_v0 }
  0x46   :  { %605 = vmatpush.bf16.msrb.mxu0 %v907_v28 }
  0x49   :  { %521 = vmatpush.bf16.msrb.mxu3 %v900_v59  ;;  %510 = vmatpush.bf16.msrb.mxu2 %v890_v2 }
  0x4a   :  { %606 = vmatpush.bf16.msrb.mxu0 %v906_v29 }
  0x4d   :  { %522 = vmatpush.bf16.msrb.mxu3 %v899_v61  ;;  %511 = vmatpush.bf16.msrb.mxu2 %v889_v4 }
  0x4e   :  { %607 = vmatpush.bf16.msrb.mxu0 %v905_v30 }
  0x51   :  { %523 = vmatpush.bf16.msrb.mxu3 %v898_v63 }
  0x55   :  { %524 = vmatpush.bf16.msrb.mxu3 %v897_v1 }
  0x8f   :  { %v97_v44 = vpop.f32.mrf.mxu1 }
  0x90   :  { %v98_v45 = vadd.f32 %v97_v44, %v70_v43 }
  0x92   :  { %v114_v46 = vmax.f32 %v98_v45, 0.0 }
  0x94   :  { %v116_v47 = vpack.c.bf16 %v114_v46, %v114_v46 }
  0x96   :  { %324 = vmatmul.bf16.vlgmr.msra.gmra.mxu2 %v116_v47  ;;  %350 = vmatmul.bf16.vlgmr.msra.gmra.mxu0 %v116_v47 }
  0x97   :  { %v99_v48 = vpop.f32.mrf.mxu1 }
  0x9f   :  { %v110_v50 = vpop.f32.mrf.mxu1 }
  0xa0   :  { %v111_v51 = vadd.f32 %v110_v50, %v71_v49 }
  0xa2   :  { %v115_v52 = vmax.f32 %v111_v51, 0.0 }
  0xa4   :  { %v117_v53 = vpack.c.bf16 %v115_v52, %v115_v52 }
  0xa6   :  { %337 = vmatmul.bf16.vlgmr.msra.gmra.mxu3 %v117_v53  ;;  %363 = vmatmul.bf16.vlgmr.msra.gmra.mxu1 %v117_v53 }
  0xa7   :  { %v112_v54 = vpop.f32.mrf.mxu1 }
 0x113   :  { %v351_v3 = vpop.f32.mrf.mxu0 }
 0x114   :  { %v352_v14 = vadd.f32 %v351_v3, %v153_v12 }
 0x119   :  { %v325_v8 = vpop.f32.mrf.mxu2 }
 0x11a   :  { %v326_v19 = vadd.f32 %v325_v8, %v152_v16 }
 0x11b   :  { %v353_v10 = vpop.f32.mrf.mxu0 }
 0x121   :  { %v327_v13 = vpop.f32.mrf.mxu2 }
 0x123   :  { %v364_v15 = vpop.f32.mrf.mxu1 }
 0x124   :  { %v365_v17 = vadd.f32 %v364_v15, %v352_v14 }
 0x126   :  { %v369_v18 = vmax.f32 %v365_v17, 0.0 }
 0x128   :  { %v371_v20 = vpack.c.bf16 %v369_v18, %v369_v18 }
 0x129   :  { %v338_v21 = vpop.f32.mrf.mxu3 }
 0x12a   :  { %v339_v22 = vadd.f32 %v338_v21, %v326_v19  ;;  %525 = vmatmul.bf16.vlgmr.msrb.gmra.mxu3 %v371_v20 }
 0x12b   :  { %v366_v23 = vpop.f32.mrf.mxu1 }
 0x12c   :  { %v368_v24 = vmax.f32 %v339_v22, 0.0 }
 0x12e   :  { %v370_v25 = vpack.c.bf16 %v368_v24, %v368_v24 }
 0x130   :  { %512 = vmatmul.bf16.vlgmr.msrb.gmra.mxu2 %v370_v25 }
 0x131   :  { %v340_v26 = vpop.f32.mrf.mxu3 }
 0x1ad   :  { %v526_v31 = vpop.f32.mrf.mxu3 }
 0x1b3   :  { %v513_v33 = vpop.f32.mrf.mxu2 }
 0x1b4   :  { %v514_v34 = vadd.f32 %v919_v32, %v513_v33 }
 0x1b5   :  { %v528_v35 = vpop.f32.mrf.mxu3 }
 0x1b6   :  { %v527_v36 = vadd.f32 %v526_v31, %v514_v34 }
 0x1b8   :  { %v530_v37 = vmax.f32 %v527_v36, 0.0 }
 0x1ba   :  { %v531_v38 = vpack.c.bf16 %v530_v37, %v530_v37 }
 0x1bb   :  { %v515_v39 = vpop.f32.mrf.mxu2 }
 0x1bc   :  { %608 = vmatmul.bf16.vlgmr.msrb.gmra.mxu0 %v531_v38 }
 0x239   :  { %v609_v41 = vpop.f32.mrf.mxu0 }
 0x23a   :  { %v610_v42 = vadd.f32 %v920_v40, %v609_v41 }
 0x23c   :  { %614 = vst.msk [vmem:[%s1104_s9] sm:$0xff] %vm613_vm1, %v610_v42 }
 0x241   :  { %v611_v43 = vpop.f32.mrf.mxu0 }
 0x242   :  { %619 = vsyncpa [#allocation3], 1 }
 0x243   :  { %620 = vsyncpa [#allocation5], 1 }

</bundles_post_ra>
